<compile_context>
chip_gen: v5e
topology: v5e:2x2
jax: 0.10.0
libtpu: 0.0.40
codegen_flags: <defaults>
</compile_context>

<pallas_src>
import jax
import jax.numpy as jnp
from jax.experimental import pallas as pl
from jax.experimental.pallas import tpu as pltpu
import numpy as np


def _mf_attack_kernel(uemb_ref, iemb_ref, out_ref):
    """uemb_ref: VMEM (TB, H)    -- gathered user embeddings (table dtype)
       iemb_ref: VMEM (TB, K, H) -- item-embedding tile (input dtype)
       out_ref:  VMEM (TB, K) f32
    pred[b, k] = sum_h iemb[b, k, h] * uemb[b, h]
    Multiply on the VPU in the native input dtype, accumulate/reduce in f32.
    """
    uemb = uemb_ref[...]                              # (TB, H)
    iemb = iemb_ref[...]                              # (TB, K, H)
    prod = iemb * uemb[:, None, :]                    # VPU broadcast-multiply
    out_ref[...] = jnp.sum(prod.astype(jnp.float32), axis=-1)   # (TB, K) f32


def _pick_batch_tile(B, K, H, itemsize, target_tile_bytes):
    """Pick TB so the iemb tile is ~target_tile_bytes and sublane-aligned."""
    row_bytes = max(1, K * H * itemsize)
    tb = target_tile_bytes // row_bytes
    if tb >= B:
        return B                       # single tile covering the full batch
    tb = max(8, (tb // 8) * 8)         # keep TB a multiple of 8 for partial-B tiles
    return int(min(tb, B))
    # TODO(synk): for very large per-user rows (K*H*itemsize >> 2 MiB) a K grid axis
    # would be needed as well; not relevant at MF-recommendation scales.


def mf_attack_forward(userid_input, iemb, uembedding_weight, *, target_tile_bytes=2 << 20):
    """userid_input: (B, 1) int32, iemb: (B, K, H), uembedding_weight: (U, H)."""
    B, K, H = iemb.shape
    U, Hw = uembedding_weight.shape
    assert Hw == H

    # Embedding lookup in the wrapper (cheap XLA gather, B*H traffic).  Clip ids so an
    # out-of-range id can never read OOB (PyTorch Embedding would raise instead).
    uid = jnp.clip(userid_input.reshape(B).astype(jnp.int32), 0, U - 1)
    uemb = jnp.take(uembedding_weight, uid, axis=0)            # (B, H), table dtype

    itemsize = jnp.dtype(iemb.dtype).itemsize
    u_itemsize = jnp.dtype(uemb.dtype).itemsize
    TB = _pick_batch_tile(B, K, H, itemsize, target_tile_bytes)
    nb = pl.cdiv(B, TB)

    # VMEM budget: double-buffered iemb + uemb tiles + out tile, with headroom.
    need = 2 * (TB * K * H * itemsize + TB * H * u_itemsize + TB * K * 4)
    vmem_limit = int(min(48 << 20, max(2 * need, 16 << 20)))   # <= 48 MiB (v7x-safe)

    grid_spec = pltpu.PrefetchScalarGridSpec(
        num_scalar_prefetch=0,
        grid=(nb,),
        in_specs=[
            pl.BlockSpec((TB, H), lambda b: (b, 0)),           # gathered user rows
            pl.BlockSpec((TB, K, H), lambda b: (b, 0, 0)),     # iemb tile (double-buffered)
        ],
        out_specs=pl.BlockSpec((TB, K), lambda b: (b, 0)),
    )

    cost = pl.CostEstimate(
        flops=2 * B * K * H,
        transcendentals=0,
        bytes_accessed=B * K * H * itemsize + B * H * u_itemsize + B * K * 4,
    )

    out = pl.pallas_call(
        _mf_attack_kernel,
        out_shape=jax.ShapeDtypeStruct((B, K), jnp.float32),
        grid_spec=grid_spec,
        compiler_params=pltpu.CompilerParams(
            dimension_semantics=("parallel",),   # independent batch tiles (2-TC on v7x)
            vmem_limit_bytes=vmem_limit,
        ),
        cost_estimate=cost,
    )(uemb, iemb)
    return out


if __name__ == "__main__":
    # Module hyper-params (small, consistent with __init__)
    maxn, maxm, hidden_dim = 10, 10, 32
    user_size = maxn + 3          # 13
    B, K, H = 2, 8, hidden_dim    # batch, items-per-user, hidden

    key = jax.random.PRNGKey(0)
    k_w, k_uid, k_iemb = jax.random.split(key, 3)

    # Deterministic init mirroring (rand - 0.5) * 0.01
    uembedding_weight = (jax.random.uniform(k_w, (user_size, H), jnp.float32) - 0.5) * 0.01
    userid_input = jax.random.randint(k_uid, (B, 1), 0, user_size, dtype=jnp.int32)
    iemb = jax.random.normal(k_iemb, (B, K, H), jnp.float32)

    pred = mf_attack_forward(userid_input, iemb, uembedding_weight)
    pred = jax.block_until_ready(pred)

    # Reference (plain JAX, same f32 multiply-reduce as torch.bmm in f32).
    uemb_ref = uembedding_weight[userid_input.reshape(B)]                  # (B, H)
    expected = jnp.sum(iemb * uemb_ref[:, None, :], axis=-1)               # (B, K)
    np.testing.assert_allclose(np.asarray(pred), np.asarray(expected),
                               rtol=1e-5, atol=1e-6)
    assert pred.shape == (B, K) and pred.dtype == jnp.float32

    # Second check: multi-tile grid with a ragged last batch tile (edge-block path).
    B2 = 20
    k_uid2, k_iemb2 = jax.random.split(k_iemb)
    userid2 = jax.random.randint(k_uid2, (B2, 1), 0, user_size, dtype=jnp.int32)
    iemb2 = jax.random.normal(k_iemb2, (B2, K, H), jnp.float32)
    pred2 = mf_attack_forward(userid2, iemb2, uembedding_weight,
                              target_tile_bytes=2048)  # force TB=8 -> grid of 3, ragged tail
    pred2 = jax.block_until_ready(pred2)
    uemb_ref2 = uembedding_weight[userid2.reshape(B2)]
    expected2 = jnp.sum(iemb2 * uemb_ref2[:, None, :], axis=-1)
    np.testing.assert_allclose(np.asarray(pred2), np.asarray(expected2),
                               rtol=1e-5, atol=1e-6)

    print("KERNEL_OK")
</pallas_src>

<mosaic_0001>
module attributes {stable_mosaic.version = 11 : i64} {
  func.func @_mf_attack_kernel(%arg0: i32, %arg1: memref<2x32xf32, #tpu.memory_space<vmem>>, %arg2: memref<2x8x32xf32, #tpu.memory_space<vmem>>, %arg3: memref<2x8xf32, #tpu.memory_space<vmem>>) attributes {dimension_semantics = [#tpu.dimension_semantics<parallel>], iteration_bounds = array<i64: 1>, scalar_prefetch = 0 : i64, scratch_operands = 0 : i64, tpu.core_type = #tpu.core_type<tc>, window_params = [{transform_indices = @transform_0, window_bounds = array<i64: 2, 32>}, {transform_indices = @transform_1, window_bounds = array<i64: 2, 8, 32>}, {transform_indices = @transform_2, window_bounds = array<i64: 2, 8>}]} {
    %c0 = arith.constant 0 : index
    %c0_0 = arith.constant 0 : index
    %0 = vector.load %arg1[%c0, %c0_0] : memref<2x32xf32, #tpu.memory_space<vmem>>, vector<2x32xf32>
    %c0_1 = arith.constant 0 : index
    %c0_2 = arith.constant 0 : index
    %c0_3 = arith.constant 0 : index
    %1 = vector.load %arg2[%c0_1, %c0_2, %c0_3] : memref<2x8x32xf32, #tpu.memory_space<vmem>>, vector<2x8x32xf32>
    %2 = vector.shape_cast %0 : vector<2x32xf32> to vector<2x1x32xf32>
    %3 = vector.broadcast %2 : vector<2x1x32xf32> to vector<2x8x32xf32>
    %4 = arith.mulf %1, %3 : vector<2x8x32xf32>
    %cst = arith.constant dense<0.000000e+00> : vector<2x8xf32>
    %5 = vector.multi_reduction <add>, %4, %cst [2] : vector<2x8x32xf32> to vector<2x8xf32>
    %c0_4 = arith.constant 0 : index
    %c0_5 = arith.constant 0 : index
    %6 = vector.load %arg3[%c0_4, %c0_5] : memref<2x8xf32, #tpu.memory_space<vmem>>, vector<2x8xf32>
    tpu.vector_store %arg3[%c0_4, %c0_5], %5 {strides = array<i32>} : memref<2x8xf32, #tpu.memory_space<vmem>>, vector<2x8xf32>,
    return
  }
  func.func @transform_0(%arg0: i32) -> (i32, i32) {
    %c0_i32 = arith.constant 0 : i32
    %c0_i32_0 = arith.constant 0 : i32
    return %arg0, %c0_i32 : i32, i32
  }
  func.func @transform_1(%arg0: i32) -> (i32, i32, i32) {
    %c0_i32 = arith.constant 0 : i32
    %c0_i32_0 = arith.constant 0 : i32
    %c0_i32_1 = arith.constant 0 : i32
    return %arg0, %c0_i32, %c0_i32_0 : i32, i32, i32
  }
  func.func @transform_2(%arg0: i32) -> (i32, i32) {
    %c0_i32 = arith.constant 0 : i32
    %c0_i32_0 = arith.constant 0 : i32
    return %arg0, %c0_i32 : i32, i32
  }
}

</mosaic_0001>

<bundles_post_ra>
// kernel: tpu_custom_call.1
= control target key start
LH: loop header
LB: loop body
LE: loop exit
PB: predicated region body
PF: predicated region fallthrough
CT: control target
= control target key end

     0   :  { %7 = vsyncpa [#allocation3], 0  ;;  %s201_s0 = inlined_call_operand.hbm [shape: f32[2,32], index: 0, kind: input, shape index: {}]   ;;  %s202_s1 = inlined_call_operand.hbm [shape: f32[2,8,32], index: 1, kind: input, shape index: {}]   ;;  %s203_s2 = inlined_call_operand.hbm [shape: f32[2,8], index: 2, kind: output, shape index: {}]  }
   0x1   :  { %8 = vsyncpa [#allocation6], 0 }
   0x2   :  { %9 = vsyncpa [#allocation4], 0  ;;  %s15_s11 = sshll.u32 %s201_s0, 4  ;;  %s172_s12 = smov [#allocation2]   ;;  %s16_s11 = int_to_ptr.hbm [resolvable:$true] %s15_s11 }
   0x3   :  { %s17_s13 = sshll.u32 %s172_s12, 4  ;;  %s25_s16 = sshll.u32 %s202_s1, 4  ;;  %s18_s13 = int_to_ptr.vmem [resolvable:$true] %s17_s13  ;;  %s26_s16 = int_to_ptr.hbm [resolvable:$true] %s25_s16 }
   0x4   :  { %20 = dma.hbm_to_vmem [thread:$0]  %s16_s11, 32, %s18_s13, [#allocation3]  }
   0x5   :  { %s173_s17 = smov [#allocation5]   ;;  %s174_s19 = smov 128  }
   0x6   :  { %s27_s18 = sshll.u32 %s173_s17, 4  ;;  %s175_s20 = smov 8   ;;  %s28_s18 = int_to_ptr.vmem [resolvable:$true] %s27_s18 }
   0x7   :  { %33 = dma.hbm_to_vmem [thread:$0]  %s26_s16, 256, %s28_s18, [#allocation6], %s174_s19, %s174_s19, %s175_s20  }
   0x8   :  { %166 = dma.done.wait [#allocation3], 32  }
   0x9   :  { %167 = vsyncadd [#allocation3], 4294967264 }
   0xa   :  { %168 = dma.done.wait [#allocation6], 256  }
   0xb   :  { %169 = vsyncadd [#allocation6], 4294967040  ;;  %v42_v0 = vld [vmem:[#allocation2] sm:$0x3]  ;;  %v43_v1 = vld [vmem:[#allocation5] sm:$0xff]  ;;  %vm53_vm0 = vcmask 261120   ;;  %v62_v11 = vlaneseq }
   0xc   :  { %v47_v2 = vperm.slane %v42_v0, 0  ;;  %v46_v3 = vrot.slane %v42_v0, 1  ;;  %v44_v6 = vld [vmem:[#allocation5 + $0x8] sm:$0xff]  ;;  %s176_s0 = smov [#allocation7]   ;;  %s78_s23 = sshll.u32 %s203_s2, 4  ;;  %vm66_vm1 = vcmask 1041409   ;;  %s79_s23 = int_to_ptr.hbm [resolvable:$true] %s78_s23 }
   0xd   :  { %v63_v12 = vand.u32 127, %v62_v11  ;;  %s76_s1 = sshll.u32 %s176_s0, 4  ;;  %vm69_vm2 = vcmask 58368   ;;  %s77_s1 = int_to_ptr.vmem [resolvable:$true] %s76_s1 }
   0xe   :  { %v51_v4 = vmul.f32 %v47_v2, %v43_v1  ;;  %v48_v5 = vperm.slane %v46_v3, 0 }
  0x10   :  { %v54_v7 = vsel %vm53_vm0, %v51_v4, 0.0  ;;  %v52_v8 = vmul.f32 %v48_v5, %v44_v6 }
  0x11   :  { %55 = vadd.xlane.f32.xlu0 %v54_v7 }
  0x12   :  { %v57_v9 = vsel %vm53_vm0, %v52_v8, 0.0 }
  0x19   :  { %58 = vadd.xlane.f32.xlu0 %v57_v9 }
  0x84   :  { %v56_v10 = vpop.xlane.xlu0 %55 }
  0x85   :  { %v64_v14 = vperm.slane %v56_v10, %v63_v12 }
  0x8c   :  { %v59_v13 = vpop.xlane.xlu0 %58 }
  0x8d   :  { %v65_v15 = vperm.slane %v59_v13, %v63_v12 }
  0x8f   :  { %v67_v16 = vsel %vm66_vm1, %v65_v15, %v64_v14 }
  0x90   :  { %70 = vst.msk [vmem:[#allocation7] sm:$0x3] %vm69_vm2, %v67_v16 }
  0x91   :  { %81 = dma.vmem_to_hbm [thread:$0]  %s77_s1, 32, %s79_s23, [#allocation4]  }
  0x92   :  { %170 = dma.done.wait [#allocation4], 32  }
  0x93   :  { %171 = vsyncadd [#allocation4], 4294967264 }
  0x94   :  { %86 = vsyncpa [#allocation3], 1 }
  0x95   :  { %87 = vsyncpa [#allocation6], 1 }
  0x96   :  { %88 = vsyncpa [#allocation4], 1 }

</bundles_post_ra>
